<compile_context>
chip_gen: v6e
topology: v6e:2x2x1
jax: 0.10.0
libtpu: 0.0.40
codegen_flags: <defaults>
</compile_context>

<pallas_src>
import jax
import jax.numpy as jnp
from jax.experimental import pallas as pl
from jax.experimental.pallas import tpu as pltpu


def _lambda_silu_kernel(x_ref, o_ref):
    # Always compute in f32 (free: op is HBM-bound; VPU/EUP have huge slack).
    xf = x_ref[...].astype(jnp.float32)
    o_ref[...] = (xf * jax.nn.sigmoid(xf)).astype(o_ref.dtype)


def _silu_ref(x):
    xf = x.astype(jnp.float32)
    return (xf * jax.nn.sigmoid(xf)).astype(x.dtype)


def _vmem_capacity_bytes():
    """Physical per-core VMEM, with a conservative fallback."""
    try:
        info = pltpu.get_tpu_info()
        v = getattr(info, "vmem_capacity_bytes", None)
        if v:
            return int(v)
    except Exception:
        pass
    return 64 << 20  # v7x-sized conservative default


def _pick_block_bytes():
    """Per-generation block size so 2 arrays x 2 buffers x block fits VMEM."""
    vmem_phys = _vmem_capacity_bytes()
    # Ask for at most half of physical VMEM (capped at 48 MiB) as scoped VMEM.
    vmem_budget = min(vmem_phys // 2, 48 << 20)
    # Keep the live double-buffered footprint (4 * block) comfortably inside it.
    block_bytes = max(1 << 20, min(8 << 20, vmem_budget // 6))
    return block_bytes, vmem_budget


def _run_silu_2d(x2d, out_dtype, block_bytes, vmem_budget):
    rows, lanes = x2d.shape
    itemsize = jnp.dtype(x2d.dtype).itemsize
    out_itemsize = jnp.dtype(out_dtype).itemsize

    # Sublane block size: multiple of 8, sized from the per-gen byte budget.
    target_rows = max(8, (block_bytes // (lanes * itemsize)) // 8 * 8)
    tile_rows = min(target_rows, rows)

    # Give v7x's two TensorCores something to split: >= 2 grid steps whenever
    # the slab is big enough to matter (>= ~1 MiB) and has enough rows.
    if tile_rows == rows and rows >= 16 and rows * lanes * itemsize >= (1 << 20):
        half = pl.cdiv(rows, 2)
        tile_rows = min(rows, ((half + 7) // 8) * 8)

    grid = (pl.cdiv(rows, tile_rows),)
    n = rows * lanes

    return pl.pallas_call(
        _lambda_silu_kernel,
        out_shape=jax.ShapeDtypeStruct((rows, lanes), out_dtype),
        grid_spec=pltpu.PrefetchScalarGridSpec(
            num_scalar_prefetch=0,
            grid=grid,
            in_specs=[pl.BlockSpec((tile_rows, lanes), lambda i: (i, 0))],
            out_specs=pl.BlockSpec((tile_rows, lanes), lambda i: (i, 0)),
        ),
        compiler_params=pltpu.CompilerParams(
            dimension_semantics=("parallel",),
            vmem_limit_bytes=int(vmem_budget),
        ),
        cost_estimate=pl.CostEstimate(
            flops=5 * n,
            transcendentals=n,
            bytes_accessed=n * (itemsize + out_itemsize),
        ),
    )(x2d)


def lambda_forward(x, out_dtype=None):
    """Lambda(func)(x) with func = x * sigmoid(x), via a Pallas TPU kernel.

    Works for any input shape; presents the data to the kernel as a
    lane-dense (rows, lanes) slab with large per-generation blocks.
    `out_dtype` (e.g. jnp.bfloat16) optionally halves the write stream.
    """
    orig_shape = x.shape
    out_dtype = jnp.dtype(out_dtype) if out_dtype is not None else x.dtype
    n = x.size

    if n == 0:
        return jnp.zeros(orig_shape, out_dtype)

    block_bytes, vmem_budget = _pick_block_bytes()

    # Fast path: flat size is a lane multiple -> pure reshape, no copies.
    lanes = None
    for cand in (1024, 512, 256, 128):
        if n % cand == 0:
            lanes = cand
            break

    if lanes is not None:
        x2d = jnp.reshape(x, (n // lanes, lanes))
        out = _run_silu_2d(x2d, out_dtype, block_bytes, vmem_budget)
        return out.reshape(orig_shape)

    # Ragged path: bulk (largest 128-multiple prefix) through the kernel,
    # tail (< 128 elements) in plain JAX.  No pad/slice full-array passes.
    n_bulk = (n // 128) * 128
    flat = jnp.reshape(x, (-1,))
    if n_bulk == 0:
        # Tiny input: the kernel would be pure overhead.
        return _silu_ref(flat).astype(out_dtype).reshape(orig_shape)

    bulk = flat[:n_bulk]
    tail = flat[n_bulk:]
    b_lanes = 128
    for cand in (1024, 512, 256):
        if n_bulk % cand == 0:
            b_lanes = cand
            break
    bulk2d = bulk.reshape(n_bulk // b_lanes, b_lanes)
    bulk_out = _run_silu_2d(bulk2d, out_dtype, block_bytes, vmem_budget)
    tail_out = _silu_ref(tail).astype(out_dtype)
    return jnp.concatenate([bulk_out.reshape(-1), tail_out]).reshape(orig_shape)


if __name__ == "__main__":
    key = jax.random.PRNGKey(0)
    # NCHW input consistent with conv-style models: batch=2, channels=4, 16x16
    x = jax.random.normal(key, (2, 4, 16, 16), dtype=jnp.float32)

    # Reference in plain JAX (same func), computed before the kernel call.
    ref = x * jax.nn.sigmoid(x)

    fwd = jax.jit(lambda_forward)
    y = jax.block_until_ready(fwd(x))

    assert y.shape == x.shape and y.dtype == x.dtype
    assert jnp.max(jnp.abs(y - ref)) < 1e-5

    print("KERNEL_OK")
</pallas_src>

<mosaic_0001>
module attributes {stable_mosaic.version = 11 : i64} {
  func.func @_lambda_silu_kernel(%arg0: i32, %arg1: memref<2x1024xf32, #tpu.memory_space<vmem>>, %arg2: memref<2x1024xf32, #tpu.memory_space<vmem>>) attributes {dimension_semantics = [#tpu.dimension_semantics<parallel>], iteration_bounds = array<i64: 1>, scalar_prefetch = 0 : i64, scratch_operands = 0 : i64, tpu.core_type = #tpu.core_type<tc>, window_params = [{transform_indices = @transform_0, window_bounds = array<i64: 2, 1024>}, {transform_indices = @transform_1, window_bounds = array<i64: 2, 1024>}]} {
    %c0 = arith.constant 0 : index
    %c0_0 = arith.constant 0 : index
    %0 = vector.load %arg1[%c0, %c0_0] : memref<2x1024xf32, #tpu.memory_space<vmem>>, vector<2x1024xf32>
    %1 = arith.negf %0 : vector<2x1024xf32>
    %2 = math.exp %1 : vector<2x1024xf32>
    %cst = arith.constant 1.000000e+00 : f32
    %3 = vector.broadcast %cst : f32 to vector<2x1024xf32>
    %4 = arith.addf %3, %2 : vector<2x1024xf32>
    %5 = arith.divf %3, %4 : vector<2x1024xf32>
    %6 = arith.mulf %0, %5 : vector<2x1024xf32>
    %c0_1 = arith.constant 0 : index
    %c0_2 = arith.constant 0 : index
    %7 = vector.load %arg2[%c0_1, %c0_2] : memref<2x1024xf32, #tpu.memory_space<vmem>>, vector<2x1024xf32>
    tpu.vector_store %arg2[%c0_1, %c0_2], %6 {strides = array<i32>} : memref<2x1024xf32, #tpu.memory_space<vmem>>, vector<2x1024xf32>,
    return
  }
  func.func @transform_0(%arg0: i32) -> (i32, i32) {
    %c0_i32 = arith.constant 0 : i32
    %c0_i32_0 = arith.constant 0 : i32
    return %arg0, %c0_i32 : i32, i32
  }
  func.func @transform_1(%arg0: i32) -> (i32, i32) {
    %c0_i32 = arith.constant 0 : i32
    %c0_i32_0 = arith.constant 0 : i32
    return %arg0, %c0_i32 : i32, i32
  }
}

</mosaic_0001>

<bundles_post_ra>
// kernel: lambda_forward.1
= control target key start
LH: loop header
LB: loop body
LE: loop exit
PB: predicated region body
PF: predicated region fallthrough
CT: control target
= control target key end

     0   :  { %s62_s0 = inlined_call_operand.vmem [shape: f32[2,1024], index: 0, kind: input, shape index: {}]   ;;  %s63_s1 = inlined_call_operand.vmem [shape: f32[2,1024], index: 1, kind: output, shape index: {}]  }
   0x1   :  { %v8_v0 = vld [vmem:[%s62_s0] sm:$0xff]  ;;  %v9_v1 = vld [vmem:[%s62_s0 + $0x8] sm:$0xff] }
   0x2   :  { %v30_v2 = vmul.f32 -1.442695, %v8_v0  ;;  %v31_v3 = vmul.f32 -1.442695, %v9_v1 }
   0x4   :  { %32 = vpow2.f32 %v30_v2 }
   0x5   :  { %34 = vpow2.f32 %v31_v3 }
  0x11   :  { %v33_v4 = vpop.eup %32 }
  0x12   :  { %v35_v5 = vpop.eup %34  ;;  %v16_v6 = vadd.f32 1.0, %v33_v4 }
  0x13   :  { %v17_v7 = vadd.f32 1.0, %v35_v5 }
  0x14   :  { %36 = vrcp.f32 %v16_v6 }
  0x15   :  { %38 = vrcp.f32 %v17_v7 }
  0x21   :  { %v37_v8 = vpop.eup %36 }
  0x22   :  { %v39_v9 = vpop.eup %38  ;;  %v22_v10 = vmul.f32 %v37_v8, %v8_v0 }
  0x23   :  { %v23_v11 = vmul.f32 %v39_v9, %v9_v1 }
  0x24   :  { %24 = vst [vmem:[%s63_s1] sm:$0xff] %v22_v10 }
  0x25   :  { %25 = vst [vmem:[%s63_s1 + $0x8] sm:$0xff] %v23_v11 }

</bundles_post_ra>
